<compile_context>
chip_gen: v6e
topology: v6e:2x2x1
jax: 0.10.0
libtpu: 0.0.40
codegen_flags: <defaults>
</compile_context>

<pallas_src>
import jax
import jax.numpy as jnp
from jax import lax
from jax.experimental import pallas as pl
from jax.experimental.pallas import tpu as pltpu

H1, H2 = 400, 300          # logical hidden sizes (PyTorch module)
H1P, H2P = 512, 384        # lane-aligned (multiple of 128) padded sizes


def _round_up(x, m):
    return (x + m - 1) // m * m


def _critic_kernel(x_ref, w1_ref, b1_ref, w2_ref, b2_ref, w3_ref, b3_ref, q_ref):
    # x_ref:  [TB, Din] f32 (concat(state, action) zero-padded to Din)
    # w1_ref: [Din, H1P] bf16   b1_ref: [1, H1P] f32
    # w2_ref: [H1P, H2P] bf16   b2_ref: [1, H2P] f32
    # w3_ref: [1, H2P]  bf16    b3_ref: [1, 1]   f32
    # q_ref:  [1, TB]   f32     (lane-dense: batch on lanes)
    x = x_ref[...].astype(jnp.bfloat16)

    # Layer 1 (fused concat handled in the wrapper: single [TB, Din] input).
    h1 = jnp.dot(x, w1_ref[...], preferred_element_type=jnp.float32)
    h1 = jnp.maximum(h1 + b1_ref[...], 0.0)                       # [TB, H1P] f32

    # Layer 2
    h2 = jnp.dot(h1.astype(jnp.bfloat16), w2_ref[...],
                 preferred_element_type=jnp.float32)
    h2 = jnp.maximum(h2 + b2_ref[...], 0.0)                       # [TB, H2P] f32

    # Output layer on the MXU, lane-dense in batch: q^T = w3 @ h2^T -> [1, TB].
    q = lax.dot_general(w3_ref[...], h2.astype(jnp.bfloat16),
                        dimension_numbers=(((1,), (1,)), ((), ())),
                        preferred_element_type=jnp.float32)
    q_ref[...] = (q + b3_ref[...]).astype(q_ref.dtype)            # [1, TB]


def _choose_batch_tile(B, block_b):
    """Pick (tb, b_pad).

    - tb is a multiple of 8 (f32 sublane); once large it snaps to a multiple of
      256 (v6e/v7x MXU M-dim; also a multiple of 128 for v5e's 4x128 MXUs).
    - Keep >= 2 grid steps when the padded batch is big enough so the
      "parallel" batch axis can shard across both v7x TensorCores.
    """
    tb = min(block_b, _round_up(B, 8))
    if tb >= 256:
        tb -= tb % 256
    b_pad = _round_up(B, tb)
    if b_pad // tb < 2 and b_pad >= 512:          # room for two MXU-sized tiles
        tb = _round_up(pl.cdiv(b_pad, 2), 256)
        b_pad = _round_up(B, tb)
    return tb, b_pad


def critic_forward(state, action, params, *, block_b=512):
    """Pallas forward of CriticNetwork. state: [B, S] f32, action: [B, A] f32."""
    w1, b1, w2, b2, w3, b3 = params
    B, S = state.shape
    A = action.shape[1]
    d_in_pad = w1.shape[0]

    # Fused concat + feature padding (tiny [B, 16] array; done once in XLA).
    x = jnp.concatenate([state, action], axis=1)
    if d_in_pad != S + A:
        x = jnp.pad(x, ((0, 0), (0, d_in_pad - (S + A))))

    tb, b_pad = _choose_batch_tile(B, block_b)
    if b_pad != B:
        x = jnp.pad(x, ((0, b_pad - B), (0, 0)))

    # Weights/biases: one full-array block, constant index_map -> VMEM-resident
    # across all grid steps.
    full = lambda arr: pl.BlockSpec(arr.shape, lambda i: (0,) * arr.ndim)

    q_pad = pl.pallas_call(
        _critic_kernel,
        out_shape=jax.ShapeDtypeStruct((1, b_pad), jnp.float32),
        grid_spec=pltpu.PrefetchScalarGridSpec(
            num_scalar_prefetch=0,
            grid=(b_pad // tb,),
            in_specs=[
                pl.BlockSpec((tb, d_in_pad), lambda i: (i, 0)),   # x tile
                full(w1), full(b1),
                full(w2), full(b2),
                full(w3), full(b3),
            ],
            # Lane-dense output row: [1, tb] blocks of a [1, b_pad] slab.
            out_specs=pl.BlockSpec((1, tb), lambda i: (0, i)),
        ),
        compiler_params=pltpu.CompilerParams(
            dimension_semantics=("parallel",)),
        # NOTE: at tb <= 1024 total VMEM use is ~3 MB; no vmem_limit_bytes
        # needed on any generation (v7x scoped default is 32 MiB).
    )(x, w1, b1, w2, b2, w3, b3)

    return q_pad[0, :B][:, None]                                  # [B, 1]


def init_critic_params(key, state_dim, n_actions):
    """PyTorch nn.Linear default init (U[-1/sqrt(fan_in), +1/sqrt(fan_in)]) on
    the logical shapes; zero-padded to lane-aligned sizes; weights stored
    pre-transposed [in, out] in bf16, biases in f32."""
    S, A = state_dim, n_actions
    d_in = S + A
    d_in_pad = _round_up(d_in, 16)

    def uinit(k, shape, fan_in):
        bound = 1.0 / float(fan_in) ** 0.5
        return jax.random.uniform(k, shape, jnp.float32, -bound, bound)

    k1, k2, k3 = jax.random.split(key, 3)

    kw1, kb1 = jax.random.split(k1)
    w1 = uinit(kw1, (d_in, H1), d_in)
    b1 = uinit(kb1, (1, H1), d_in)
    w1 = jnp.pad(w1, ((0, d_in_pad - d_in), (0, H1P - H1)))  # zero rows & lanes
    b1 = jnp.pad(b1, ((0, 0), (0, H1P - H1)))

    kw2, kb2 = jax.random.split(k2)
    w2 = uinit(kw2, (H1, H2), H1)
    b2 = uinit(kb2, (1, H2), H1)
    w2 = jnp.pad(w2, ((0, H1P - H1), (0, H2P - H2)))
    b2 = jnp.pad(b2, ((0, 0), (0, H2P - H2)))

    kw3, kb3 = jax.random.split(k3)
    w3 = uinit(kw3, (1, H2), H2)                 # row vector [1, H2]
    b3 = uinit(kb3, (1, 1), H2)
    w3 = jnp.pad(w3, ((0, 0), (0, H2P - H2)))

    return (w1.astype(jnp.bfloat16), b1,
            w2.astype(jnp.bfloat16), b2,
            w3.astype(jnp.bfloat16), b3)


def critic_ref(state, action, params):
    """Pure-JAX reference with the same bf16/f32 mixed precision."""
    w1, b1, w2, b2, w3, b3 = params
    d_in_pad = w1.shape[0]
    x = jnp.concatenate([state, action], axis=1)
    x = jnp.pad(x, ((0, 0), (0, d_in_pad - x.shape[1]))).astype(jnp.bfloat16)
    h1 = jnp.maximum(
        jnp.dot(x, w1, preferred_element_type=jnp.float32) + b1, 0.0)
    h2 = jnp.maximum(
        jnp.dot(h1.astype(jnp.bfloat16), w2,
                preferred_element_type=jnp.float32) + b2, 0.0)
    q = lax.dot_general(w3, h2.astype(jnp.bfloat16),
                        dimension_numbers=(((1,), (1,)), ((), ())),
                        preferred_element_type=jnp.float32) + b3
    return q.T                                                     # [B, 1]


if __name__ == "__main__":
    key = jax.random.PRNGKey(0)
    k_p, k_s, k_a = jax.random.split(key, 3)

    batch = 2
    state_dim = 8      # corresponds to state_dim=[8] in the PyTorch ctor
    n_actions = 4

    params = init_critic_params(k_p, state_dim, n_actions)
    state = jax.random.normal(k_s, (batch, state_dim), jnp.float32)
    action = jax.random.normal(k_a, (batch, n_actions), jnp.float32)

    q = critic_forward(state, action, params)
    q = jax.block_until_ready(q)

    q_ref = critic_ref(state, action, params)
    assert q.shape == (batch, 1), q.shape
    assert jnp.allclose(q, q_ref, atol=1e-2, rtol=1e-2), (q, q_ref)

    print("KERNEL_OK")
</pallas_src>

<mosaic_0001>
module attributes {stable_mosaic.version = 11 : i64} {
  func.func @_critic_kernel(%arg0: i32, %arg1: memref<8x16xf32, #tpu.memory_space<vmem>>, %arg2: memref<16x512xbf16, #tpu.memory_space<vmem>>, %arg3: memref<1x512xf32, #tpu.memory_space<vmem>>, %arg4: memref<512x384xbf16, #tpu.memory_space<vmem>>, %arg5: memref<1x384xf32, #tpu.memory_space<vmem>>, %arg6: memref<1x384xbf16, #tpu.memory_space<vmem>>, %arg7: memref<1x1xf32, #tpu.memory_space<vmem>>, %arg8: memref<1x8xf32, #tpu.memory_space<vmem>>) attributes {dimension_semantics = [#tpu.dimension_semantics<parallel>], iteration_bounds = array<i64: 1>, scalar_prefetch = 0 : i64, scratch_operands = 0 : i64, tpu.core_type = #tpu.core_type<tc>, window_params = [{transform_indices = @transform_0, window_bounds = array<i64: 8, 16>}, {pipeline_mode = #tpu.pipeline_mode<synchronous>, transform_indices = @transform_1, window_bounds = array<i64: 16, 512>}, {pipeline_mode = #tpu.pipeline_mode<synchronous>, transform_indices = @transform_2, window_bounds = array<i64: 1, 512>}, {pipeline_mode = #tpu.pipeline_mode<synchronous>, transform_indices = @transform_3, window_bounds = array<i64: 512, 384>}, {pipeline_mode = #tpu.pipeline_mode<synchronous>, transform_indices = @transform_4, window_bounds = array<i64: 1, 384>}, {pipeline_mode = #tpu.pipeline_mode<synchronous>, transform_indices = @transform_5, window_bounds = array<i64: 1, 384>}, {pipeline_mode = #tpu.pipeline_mode<synchronous>, transform_indices = @transform_6, window_bounds = array<i64: 1, 1>}, {transform_indices = @transform_7, window_bounds = array<i64: 1, 8>}]} {
    %c0 = arith.constant 0 : index
    %c0_0 = arith.constant 0 : index
    %0 = vector.load %arg1[%c0, %c0_0] : memref<8x16xf32, #tpu.memory_space<vmem>>, vector<8x16xf32>
    %1 = arith.truncf %0 : vector<8x16xf32> to vector<8x16xbf16>
    %c0_1 = arith.constant 0 : index
    %c0_2 = arith.constant 0 : index
    %2 = vector.load %arg2[%c0_1, %c0_2] : memref<16x512xbf16, #tpu.memory_space<vmem>>, vector<16x512xbf16>
    %cst = arith.constant dense<0.000000e+00> : vector<8x512xf32>
    %3 = tpu.matmul %1, %2, %cst {dimension_numbers = #tpu.dot_dimension_numbers<[1], [0], [0], [1], [0, 0, 1, 1], [], []>} : vector<8x16xbf16>, vector<16x512xbf16>, vector<8x512xf32> -> vector<8x512xf32>
    %c0_3 = arith.constant 0 : index
    %c0_4 = arith.constant 0 : index
    %4 = vector.load %arg3[%c0_3, %c0_4] : memref<1x512xf32, #tpu.memory_space<vmem>>, vector<1x512xf32>
    %5 = vector.broadcast %4 : vector<1x512xf32> to vector<8x512xf32>
    %6 = arith.addf %3, %5 : vector<8x512xf32>
    %cst_5 = arith.constant 0.000000e+00 : f32
    %7 = vector.broadcast %cst_5 : f32 to vector<8x512xf32>
    %8 = arith.maximumf %6, %7 : vector<8x512xf32>
    %9 = arith.truncf %8 : vector<8x512xf32> to vector<8x512xbf16>
    %c0_6 = arith.constant 0 : index
    %c0_7 = arith.constant 0 : index
    %10 = vector.load %arg4[%c0_6, %c0_7] : memref<512x384xbf16, #tpu.memory_space<vmem>>, vector<512x384xbf16>
    %cst_8 = arith.constant dense<0.000000e+00> : vector<8x384xf32>
    %11 = tpu.matmul %9, %10, %cst_8 {dimension_numbers = #tpu.dot_dimension_numbers<[1], [0], [0], [1], [0, 0, 1, 1], [], []>} : vector<8x512xbf16>, vector<512x384xbf16>, vector<8x384xf32> -> vector<8x384xf32>
    %c0_9 = arith.constant 0 : index
    %c0_10 = arith.constant 0 : index
    %12 = vector.load %arg5[%c0_9, %c0_10] : memref<1x384xf32, #tpu.memory_space<vmem>>, vector<1x384xf32>
    %13 = vector.broadcast %12 : vector<1x384xf32> to vector<8x384xf32>
    %14 = arith.addf %11, %13 : vector<8x384xf32>
    %cst_11 = arith.constant 0.000000e+00 : f32
    %15 = vector.broadcast %cst_11 : f32 to vector<8x384xf32>
    %16 = arith.maximumf %14, %15 : vector<8x384xf32>
    %c0_12 = arith.constant 0 : index
    %c0_13 = arith.constant 0 : index
    %17 = vector.load %arg6[%c0_12, %c0_13] : memref<1x384xbf16, #tpu.memory_space<vmem>>, vector<1x384xbf16>
    %18 = arith.truncf %16 : vector<8x384xf32> to vector<8x384xbf16>
    %cst_14 = arith.constant dense<0.000000e+00> : vector<1x8xf32>
    %19 = tpu.matmul %17, %18, %cst_14 {dimension_numbers = #tpu.dot_dimension_numbers<[1], [1], [0], [0], [0, 0, 1, 0], [], []>} : vector<1x384xbf16>, vector<8x384xbf16>, vector<1x8xf32> -> vector<1x8xf32>
    %c0_15 = arith.constant 0 : index
    %c0_16 = arith.constant 0 : index
    %20 = vector.load %arg7[%c0_15, %c0_16] : memref<1x1xf32, #tpu.memory_space<vmem>>, vector<1x1xf32>
    %21 = vector.broadcast %20 : vector<1x1xf32> to vector<1x8xf32>
    %22 = arith.addf %19, %21 : vector<1x8xf32>
    %c0_17 = arith.constant 0 : index
    %c0_18 = arith.constant 0 : index
    %23 = vector.load %arg8[%c0_17, %c0_18] : memref<1x8xf32, #tpu.memory_space<vmem>>, vector<1x8xf32>
    tpu.vector_store %arg8[%c0_17, %c0_18], %22 {strides = array<i32>} : memref<1x8xf32, #tpu.memory_space<vmem>>, vector<1x8xf32>,
    return
  }
  func.func @transform_0(%arg0: i32) -> (i32, i32) {
    %c0_i32 = arith.constant 0 : i32
    %c0_i32_0 = arith.constant 0 : i32
    return %arg0, %c0_i32 : i32, i32
  }
  func.func @transform_1(%arg0: i32) -> (i32, i32) {
    %c0_i32 = arith.constant 0 : i32
    %c0_i32_0 = arith.constant 0 : i32
    %c0_i32_1 = arith.constant 0 : i32
    return %c0_i32, %c0_i32_0 : i32, i32
  }
  func.func @transform_2(%arg0: i32) -> (i32, i32) {
    %c0_i32 = arith.constant 0 : i32
    %c0_i32_0 = arith.constant 0 : i32
    %c0_i32_1 = arith.constant 0 : i32
    return %c0_i32, %c0_i32_0 : i32, i32
  }
  func.func @transform_3(%arg0: i32) -> (i32, i32) {
    %c0_i32 = arith.constant 0 : i32
    %c0_i32_0 = arith.constant 0 : i32
    %c0_i32_1 = arith.constant 0 : i32
    return %c0_i32, %c0_i32_0 : i32, i32
  }
  func.func @transform_4(%arg0: i32) -> (i32, i32) {
    %c0_i32 = arith.constant 0 : i32
    %c0_i32_0 = arith.constant 0 : i32
    %c0_i32_1 = arith.constant 0 : i32
    return %c0_i32, %c0_i32_0 : i32, i32
  }
  func.func @transform_5(%arg0: i32) -> (i32, i32) {
    %c0_i32 = arith.constant 0 : i32
    %c0_i32_0 = arith.constant 0 : i32
    %c0_i32_1 = arith.constant 0 : i32
    return %c0_i32, %c0_i32_0 : i32, i32
  }
  func.func @transform_6(%arg0: i32) -> (i32, i32) {
    %c0_i32 = arith.constant 0 : i32
    %c0_i32_0 = arith.constant 0 : i32
    %c0_i32_1 = arith.constant 0 : i32
    return %c0_i32, %c0_i32_0 : i32, i32
  }
  func.func @transform_7(%arg0: i32) -> (i32, i32) {
    %c0_i32 = arith.constant 0 : i32
    %c0_i32_0 = arith.constant 0 : i32
    return %c0_i32, %arg0 : i32, i32
  }
}

</mosaic_0001>

<bundles_post_ra>
// kernel: tpu_custom_call.1
= control target key start
LH: loop header
LB: loop body
LE: loop exit
PB: predicated region body
PF: predicated region fallthrough
CT: control target
= control target key end

     0   :  { %s1664_s0 = inlined_call_operand.hbm [shape: f32[8,16], index: 0, kind: input, shape index: {}]   ;;  %s1665_s1 = inlined_call_operand.hbm [shape: bf16[16,512], index: 1, kind: input, shape index: {}]   ;;  %s1666_s2 = inlined_call_operand.vmem [shape: f32[1,512], index: 2, kind: input, shape index: {}]   ;;  %s1667_s3 = inlined_call_operand.hbm [shape: bf16[512,384], index: 3, kind: input, shape index: {}]   ;;  %s1668_s4 = inlined_call_operand.vmem [shape: f32[1,384], index: 4, kind: input, shape index: {}]   ;;  %s1669_s5 = inlined_call_operand.vmem [shape: bf16[1,384], index: 5, kind: input, shape index: {}]   ;;  %s1670_s6 = inlined_call_operand.<no memory space> [shape: f32[1,1], index: 6, kind: input, shape index: {}]   ;;  %s1671_s7 = inlined_call_operand.hbm [shape: f32[1,8], index: 7, kind: output, shape index: {}]  }
   0x1   :  { %v12_v0 = vstv %s1670_s6 }
   0x2   :  { %13 = vst [vmem:[#allocation2] sm:$0x1] %v12_v0 }
   0x3   :  { %14 = vsyncpa [#allocation4], 0 }
   0x4   :  { %15 = vsyncpa [#allocation7], 0 }
   0x5   :  { %16 = vsyncpa [#allocation5], 0  ;;  %s1560_s26 = smov [#allocation6]  }
   0x6   :  { %s32_s27 = sshll.u32 %s1560_s26, 4  ;;  %s33_s27 = int_to_ptr.vmem [resolvable:$true] %s32_s27 }
   0x7   :  { %s1482_s28 = scalar_lea.vmem %s33_s27, 512  ;;  %p1487_p1 = scmp.lt.s32.totalorder %s33_s27, %s33_s27 }
   0x8   :  { %p1483_p0 = scmp.ne.s32.totalorder %s33_s27, %s1482_s28  ;;  %p1488_p2 = scmp.lt.s32.totalorder %s1482_s28, %s1482_s28 }
   0xa   :  { %p1489_p3 = por %p1488_p2, %p1487_p1 }
   0xc   :  { %p1490_p4 = pnand %p1489_p3, %p1483_p0 }
   0xe   :  { %1493 = shalt.err (!%p1490_p4)
}
   0xf   :  { %s1561_s29 = smov 256   ;;  %s1562_s30 = smov 16  }
  0x10   :  { %38 = dma.hbm_to_vmem [thread:$0]  %s1665_s1, 512, %s33_s27, [#allocation7], %s1561_s29, %s1561_s29, %s1562_s30  }
  0x11   :  { %s1563_s6 = smov [#allocation3]   ;;  %s1564_s11 = smov [#allocation8]  }
  0x12   :  { %s23_s10 = sshll.u32 %s1563_s6, 4  ;;  %s46_s12 = sshll.u32 %s1564_s11, 4  ;;  %s24_s10 = int_to_ptr.vmem [resolvable:$true] %s23_s10  ;;  %s47_s12 = int_to_ptr.vmem [resolvable:$true] %s46_s12 }
  0x13   :  { %s1502_s13 = scalar_lea.vmem %s24_s10, 128  ;;  %p1507_p6 = scmp.lt.s32.totalorder %s24_s10, %s24_s10 }
  0x14   :  { %p1503_p5 = scmp.ne.s32.totalorder %s24_s10, %s1502_s13  ;;  %p1508_p7 = scmp.lt.s32.totalorder %s1502_s13, %s1502_s13 }
  0x16   :  { %p1509_p8 = por %p1508_p7, %p1507_p6 }
  0x18   :  { %p1510_p9 = pnand %p1509_p8, %p1503_p5 }
  0x1a   :  { %1513 = shalt.err (!%p1510_p9)
}
  0x1b   :  { %26 = dma.hbm_to_vmem [thread:$0]  %s1664_s0, 128, %s24_s10, [#allocation4]  }
  0x1c   :  { %s1522_s16 = scalar_lea.vmem %s47_s12, 12288  ;;  %p1527_p11 = scmp.lt.s32.totalorder %s47_s12, %s47_s12 }
  0x1d   :  { %p1523_p10 = scmp.ne.s32.totalorder %s47_s12, %s1522_s16  ;;  %p1528_p12 = scmp.lt.s32.totalorder %s1522_s16, %s1522_s16 }
  0x1f   :  { %p1529_p13 = por %p1528_p12, %p1527_p11 }
  0x21   :  { %p1530_p0 = pnand %p1529_p13, %p1523_p10 }
  0x23   :  { %1533 = shalt.err (!%p1530_p0)
}
  0x24   :  { %s1565_s1 = smov 192   ;;  %s1566_s17 = smov 12  }
  0x25   :  { %52 = dma.hbm_to_vmem [thread:$0]  %s1667_s3, 12288, %s47_s12, [#allocation7], %s1565_s1, %s1565_s1, %s1566_s17  }
  0x26   :  { %1554 = dma.done.wait [#allocation4], 128  }
  0x27   :  { %1555 = vsyncadd [#allocation4], 4294967168 }
  0x28   :  { %1556 = dma.done.wait [#allocation7], 12800  }
  0x29   :  { %1557 = vsyncadd [#allocation7], 4294954496  ;;  %v1567_v1 = vmov 0   ;;  %v1340_v2 = vld [vmem:[#allocation6 + $0x4] ss:$16 sps:$4 sm:$0xff]   ;;  %v69_v6 = vld [vmem:[#allocation3] sm:$0xff] }
  0x2a   :  { %153 = vmatprep.mubr.bf16.mxu0 %v1567_v1  ;;  %194 = vmatprep.mubr.bf16.mxu1 %v1567_v1  ;;  %v1342_v3 = vld [vmem:[#allocation6 + $0xc] ss:$16 sps:$4 sm:$0xff]   ;;  %v1344_v4 = vld [vmem:[#allocation6] ss:$16 sps:$4 sm:$0xff]   ;;  %v1345_v5 = vld [vmem:[#allocation6 + $0x8] ss:$16 sps:$4 sm:$0xff]   ;;  %v70_v7 = vpack.c.bf16 %v69_v6, %v69_v6 }
  0x2b   :  { %1339 = vset.pattern.permute.xlu0 %v1567_v1  ;;  %135 = vmatprep.subr.bf16.mxu0 %v1340_v2  ;;  %v1346_v8 = vld [vmem:[#allocation8 + $0xa8] ss:$12 sps:$4 sm:$0xff]   ;;  %vm117_vm0 = vcmask 130048   ;;  %v1348_v9 = vld [vmem:[#allocation8 + $0xac] ss:$12 sps:$4 sm:$0xff]   ;;  %vm1570_vm1 = vmmov 0  }
  0x2c   :  { %176 = vmatprep.subr.bf16.mxu1 %v1342_v3  ;;  %136 = vmatpush1.bf16.msra.mxu0 %v1344_v4  ;;  %v1349_v10 = vld [vmem:[#allocation8 + $0x228] ss:$12 sps:$4 sm:$0xff]   ;;  %v1351_v11 = vld [vmem:[#allocation8 + $0x22c] ss:$12 sps:$4 sm:$0xff]   ;;  %v1352_v13 = vld [vmem:[#allocation8 + $0x90] ss:$12 sps:$4 sm:$0xff]  }
  0x2d   :  { %177 = vmatpush1.bf16.msra.mxu1 %v1345_v5  ;;  %868 = vmatprep.subr.bf16.mxu0 %v1348_v9  ;;  %v1354_v12 = vld [vmem:[#allocation8 + $0x94] ss:$12 sps:$4 sm:$0xff]   ;;  %v1355_v15 = vld [vmem:[#allocation8 + $0x210] ss:$12 sps:$4 sm:$0xff]   ;;  %v1358_v18 = vld [vmem:[#allocation8 + $0x78] ss:$12 sps:$4 sm:$0xff]  }
  0x2e   :  { %909 = vmatprep.subr.bf16.mxu1 %v1351_v11  ;;  %v1357_v14 = vld [vmem:[#allocation8 + $0x214] ss:$12 sps:$4 sm:$0xff]   ;;  %v1360_v16 = vld [vmem:[#allocation8 + $0x7c] ss:$12 sps:$4 sm:$0xff]   ;;  %v1361_v19 = vld [vmem:[#allocation8 + $0x1f8] ss:$12 sps:$4 sm:$0xff]  }
  0x2f   :  { %1176 = vmatmul.mubr.msk.bf16.vlgmr.msra.gmra.mxu0 %vm117_vm0, %v70_v7  ;;  %v1363_v17 = vld [vmem:[#allocation8 + $0x1fc] ss:$12 sps:$4 sm:$0xff]   ;;  %v1366_v20 = vld [vmem:[#allocation8 + $0x64] ss:$12 sps:$4 sm:$0xff]   ;;  %v1364_v22 = vld [vmem:[#allocation8 + $0x60] ss:$12 sps:$4 sm:$0xff]  }
  0x30   :  { %1177 = vmatmul.mubr.msk.bf16.vlgmr.msra.gmra.mxu1 %vm117_vm0, %v70_v7  ;;  %869 = vmatpush1.bf16.msra.mxu0 %v1346_v8  ;;  %v1369_v21 = vld [vmem:[#allocation8 + $0x1e4] ss:$12 sps:$4 sm:$0xff]   ;;  %v1367_v23 = vld [vmem:[#allocation8 + $0x1e0] ss:$12 sps:$4 sm:$0xff]   ;;  %v1370_v26 = vld [vmem:[#allocation8 + $0x48] ss:$12 sps:$4 sm:$0xff]  }
  0x31   :  { %910 = vmatpush1.bf16.msra.mxu1 %v1349_v10  ;;  %870 = vmatprep.subr.bf16.mxu0 %v1354_v12  ;;  %v1372_v24 = vld [vmem:[#allocation8 + $0x4c] ss:$12 sps:$4 sm:$0xff]   ;;  %v1373_v27 = vld [vmem:[#allocation8 + $0x1c8] ss:$12 sps:$4 sm:$0xff]   ;;  %v1376_v30 = vld [vmem:[#allocation8 + $0x30] ss:$12 sps:$4 sm:$0xff]   ;;  %v77_v10 = vlaneseq }
  0x32   :  { %911 = vmatprep.subr.bf16.mxu1 %v1357_v14  ;;  %v1375_v25 = vld [vmem:[#allocation8 + $0x1cc] ss:$12 sps:$4 sm:$0xff]   ;;  %v1378_v28 = vld [vmem:[#allocation8 + $0x34] ss:$12 sps:$4 sm:$0xff]   ;;  %v1379_v31 = vld [vmem:[#allocation8 + $0x1b0] ss:$12 sps:$4 sm:$0xff]  }
  0x33   :  { %v1381_v29 = vld [vmem:[#allocation8 + $0x1b4] ss:$12 sps:$4 sm:$0xff]   ;;  %v1384_v32 = vld [vmem:[#allocation8 + $0x1c] ss:$12 sps:$4 sm:$0xff]   ;;  %v1382_v34 = vld [vmem:[#allocation8 + $0x18] ss:$12 sps:$4 sm:$0xff]  }
  0x34   :  { %871 = vmatpush1.bf16.msra.mxu0 %v1352_v13  ;;  %v1387_v33 = vld [vmem:[#allocation8 + $0x19c] ss:$12 sps:$4 sm:$0xff]   ;;  %v1385_v35 = vld [vmem:[#allocation8 + $0x198] ss:$12 sps:$4 sm:$0xff]   ;;  %v1388_v38 = vld [vmem:[#allocation8] ss:$12 sps:$4 sm:$0xff]  }
  0x35   :  { %912 = vmatpush1.bf16.msra.mxu1 %v1355_v15  ;;  %872 = vmatprep.subr.bf16.mxu0 %v1360_v16  ;;  %v1390_v36 = vld [vmem:[#allocation8 + $0x4] ss:$12 sps:$4 sm:$0xff]   ;;  %v1391_v39 = vld [vmem:[#allocation8 + $0x180] ss:$12 sps:$4 sm:$0xff]   ;;  %v1394_v42 = vld [vmem:[#allocation8 + $0x168] ss:$12 sps:$4 sm:$0xff]  }
  0x36   :  { %913 = vmatprep.subr.bf16.mxu1 %v1363_v17  ;;  %v1393_v37 = vld [vmem:[#allocation8 + $0x184] ss:$12 sps:$4 sm:$0xff]   ;;  %v1396_v40 = vld [vmem:[#allocation8 + $0x16c] ss:$12 sps:$4 sm:$0xff]   ;;  %v1397_v43 = vld [vmem:[#allocation8 + $0x2e8] ss:$12 sps:$4 sm:$0xff]  }
  0x37   :  { %v1399_v41 = vld [vmem:[#allocation8 + $0x2ec] ss:$12 sps:$4 sm:$0xff]   ;;  %v1402_v44 = vld [vmem:[#allocation8 + $0x154] ss:$12 sps:$4 sm:$0xff]   ;;  %v1400_v45 = vld [vmem:[#allocation8 + $0x150] ss:$12 sps:$4 sm:$0xff]  }
  0x38   :  { %873 = vmatpush1.bf16.msra.mxu0 %v1358_v18  ;;  %v1405_v46 = vld [vmem:[#allocation8 + $0x2d4] ss:$12 sps:$4 sm:$0xff]   ;;  %v1403_v47 = vld [vmem:[#allocation8 + $0x2d0] ss:$12 sps:$4 sm:$0xff]   ;;  %v1406_v50 = vld [vmem:[#allocation8 + $0x138] ss:$12 sps:$4 sm:$0xff]  }
  0x39   :  { %914 = vmatpush1.bf16.msra.mxu1 %v1361_v19  ;;  %874 = vmatprep.subr.bf16.mxu0 %v1366_v20  ;;  %v1408_v48 = vld [vmem:[#allocation8 + $0x13c] ss:$12 sps:$4 sm:$0xff]   ;;  %v1409_v51 = vld [vmem:[#allocation8 + $0x2b8] ss:$12 sps:$4 sm:$0xff]   ;;  %v1412_v54 = vld [vmem:[#allocation8 + $0x120] ss:$12 sps:$4 sm:$0xff]  }
  0x3a   :  { %915 = vmatprep.subr.bf16.mxu1 %v1369_v21  ;;  %v1411_v49 = vld [vmem:[#allocation8 + $0x2bc] ss:$12 sps:$4 sm:$0xff]   ;;  %v1414_v52 = vld [vmem:[#allocation8 + $0x124] ss:$12 sps:$4 sm:$0xff]   ;;  %v1415_v55 = vld [vmem:[#allocation8 + $0x2a0] ss:$12 sps:$4 sm:$0xff]  }
  0x3b   :  { %v1417_v53 = vld [vmem:[#allocation8 + $0x2a4] ss:$12 sps:$4 sm:$0xff]   ;;  %v1420_v56 = vld [vmem:[#allocation8 + $0x10c] ss:$12 sps:$4 sm:$0xff]   ;;  %v1418_v58 = vld [vmem:[#allocation8 + $0x108] ss:$12 sps:$4 sm:$0xff]  }
  0x3c   :  { %875 = vmatpush1.bf16.msra.mxu0 %v1364_v22  ;;  %v1423_v57 = vld [vmem:[#allocation8 + $0x28c] ss:$12 sps:$4 sm:$0xff]   ;;  %v1421_v59 = vld [vmem:[#allocation8 + $0x288] ss:$12 sps:$4 sm:$0xff]   ;;  %v1424_v62 = vld [vmem:[#allocation8 + $0xf0] ss:$12 sps:$4 sm:$0xff]  }
  0x3d   :  { %916 = vmatpush1.bf16.msra.mxu1 %v1367_v23  ;;  %876 = vmatprep.subr.bf16.mxu0 %v1372_v24  ;;  %v1426_v60 = vld [vmem:[#allocation8 + $0xf4] ss:$12 sps:$4 sm:$0xff]   ;;  %v1427_v63 = vld [vmem:[#allocation8 + $0x270] ss:$12 sps:$4 sm:$0xff]   ;;  %v1430_v2 = vld [vmem:[#allocation8 + $0xd8] ss:$12 sps:$4 sm:$0xff]  }
  0x3e   :  { %917 = vmatprep.subr.bf16.mxu1 %v1375_v25  ;;  %v1429_v61 = vld [vmem:[#allocation8 + $0x274] ss:$12 sps:$4 sm:$0xff]   ;;  %v1432_v0 = vld [vmem:[#allocation8 + $0xdc] ss:$12 sps:$4 sm:$0xff]   ;;  %v1433_v3 = vld [vmem:[#allocation8 + $0x258] ss:$12 sps:$4 sm:$0xff]  }
  0x3f   :  { %v1435_v1 = vld [vmem:[#allocation8 + $0x25c] ss:$12 sps:$4 sm:$0xff]   ;;  %v1438_v4 = vld [vmem:[#allocation8 + $0xc4] ss:$12 sps:$4 sm:$0xff]   ;;  %v1436_v6 = vld [vmem:[#allocation8 + $0xc0] ss:$12 sps:$4 sm:$0xff]  }
  0x40   :  { %877 = vmatpush1.bf16.msra.mxu0 %v1370_v26  ;;  %v1441_v5 = vld [vmem:[#allocation8 + $0x244] ss:$12 sps:$4 sm:$0xff]   ;;  %v1439_v7 = vld [vmem:[#allocation8 + $0x240] ss:$12 sps:$4 sm:$0xff]   ;;  %v1624_v11 = vshrl.u32 %v77_v10, 7  ;;  %vm1154_vm2 = vcmask 57344  }
  0x41   :  { %918 = vmatpush1.bf16.msra.mxu1 %v1373_v27  ;;  %878 = vmatprep.subr.bf16.mxu0 %v1378_v28  ;;  %v1442_v8 = vld [vmem:[#allocation8 + $0x170] ss:$12 sps:$4 sm:$0xff]   ;;  %v75_v14 = vld [vmem:[%s1666_s2] sm:$0xf] }
  0x42   :  { %919 = vmatprep.subr.bf16.mxu1 %v1381_v29  ;;  %v1443_v9 = vld [vmem:[#allocation8 + $0x2f0] ss:$12 sps:$4 sm:$0xff]   ;;  %v1627_v12 = vsub.s32 0, %v1624_v11  ;;  %v87_v13 = vsub.s32 2, %v1624_v11  ;;  %v83_v15 = vsub.s32 1, %v1624_v11  ;;  %v91_v16 = vsub.s32 3, %v1624_v11 }
  0x43   :  { %v1274_v10 = vld.sshfl [vmem:[%s1669_s5] sm:$0x13 pattern:$0x75316420] }
  0x44   :  { %879 = vmatpush1.bf16.msra.mxu0 %v1376_v30  ;;  %v80_v17 = vrot.slane %v75_v14, %v1627_v12  ;;  %v88_v18 = vrot.slane %v75_v14, %v87_v13  ;;  %v84_v19 = vrot.slane %v75_v14, %v83_v15  ;;  %v92_v20 = vrot.slane %v75_v14, %v91_v16 }
  0x45   :  { %920 = vmatpush1.bf16.msra.mxu1 %v1379_v31  ;;  %880 = vmatprep.subr.bf16.mxu0 %v1384_v32  ;;  %v1055_v14 = vcombine.high %v1274_v10, %v1274_v10 }
  0x46   :  { %921 = vmatprep.subr.bf16.mxu1 %v1387_v33 }
  0x48   :  { %881 = vmatpush1.bf16.msra.mxu0 %v1382_v34 }
  0x49   :  { %922 = vmatpush1.bf16.msra.mxu1 %v1385_v35  ;;  %882 = vmatprep.subr.bf16.mxu0 %v1390_v36 }
  0x4a   :  { %923 = vmatprep.subr.bf16.mxu1 %v1393_v37 }
  0x4c   :  { %883 = vmatpush1.bf16.msra.mxu0 %v1388_v38 }
  0x4d   :  { %924 = vmatpush1.bf16.msra.mxu1 %v1391_v39  ;;  %884 = vmatprep.subr.bf16.mxu0 %v1396_v40  ;;  %v1444_v40 = vld [vmem:[#allocation8 + $0xb0] ss:$12 sps:$4 sm:$0xff]  }
  0x4e   :  { %925 = vmatprep.subr.bf16.mxu1 %v1399_v41  ;;  %v1445_v41 = vld [vmem:[#allocation8 + $0x230] ss:$12 sps:$4 sm:$0xff]  }
  0x50   :  { %885 = vmatpush2.bf16.msra.mxu0 %v1394_v42 }
  0x51   :  { %926 = vmatpush2.bf16.msra.mxu1 %v1397_v43  ;;  %886 = vmatprep.subr.bf16.mxu0 %v1402_v44  ;;  %v1446_v43 = vld [vmem:[#allocation8 + $0x158] ss:$12 sps:$4 sm:$0xff]  }
  0x52   :  { %927 = vmatprep.subr.bf16.mxu1 %v1405_v46  ;;  %v1447_v44 = vld [vmem:[#allocation8 + $0x2d8] ss:$12 sps:$4 sm:$0xff]  }
  0x53   :  { %v1449_v46 = vld [vmem:[#allocation8 + $0x218] ss:$12 sps:$4 sm:$0xff]  }
  0x54   :  { %887 = vmatpush2.bf16.msra.mxu0 %v1400_v45  ;;  %v1448_v45 = vld [vmem:[#allocation8 + $0x98] ss:$12 sps:$4 sm:$0xff]  }
  0x55   :  { %928 = vmatpush2.bf16.msra.mxu1 %v1403_v47  ;;  %888 = vmatprep.subr.bf16.mxu0 %v1408_v48  ;;  %v1450_v47 = vld [vmem:[#allocation8 + $0x140] ss:$12 sps:$4 sm:$0xff]  }
  0x56   :  { %929 = vmatprep.subr.bf16.mxu1 %v1411_v49  ;;  %v1451_v48 = vld [vmem:[#allocation8 + $0x2c0] ss:$12 sps:$4 sm:$0xff]  }
  0x57   :  { %v1452_v49 = vld [vmem:[#allocation8 + $0x80] ss:$12 sps:$4 sm:$0xff]  }
  0x58   :  { %889 = vmatpush2.bf16.msra.mxu0 %v1406_v50  ;;  %v1453_v50 = vld [vmem:[#allocation8 + $0x200] ss:$12 sps:$4 sm:$0xff]  }
  0x59   :  { %930 = vmatpush2.bf16.msra.mxu1 %v1409_v51  ;;  %890 = vmatprep.subr.bf16.mxu0 %v1414_v52  ;;  %v1454_v51 = vld [vmem:[#allocation8 + $0x128] ss:$12 sps:$4 sm:$0xff]  }
  0x5a   :  { %931 = vmatprep.subr.bf16.mxu1 %v1417_v53  ;;  %v1455_v52 = vld [vmem:[#allocation8 + $0x2a8] ss:$12 sps:$4 sm:$0xff]  }
  0x5b   :  { %v1456_v53 = vld [vmem:[#allocation8 + $0x68] ss:$12 sps:$4 sm:$0xff]  }
  0x5c   :  { %891 = vmatpush2.bf16.msra.mxu0 %v1412_v54  ;;  %v1457_v54 = vld [vmem:[#allocation8 + $0x1e8] ss:$12 sps:$4 sm:$0xff]  }
  0x5d   :  { %932 = vmatpush2.bf16.msra.mxu1 %v1415_v55  ;;  %892 = vmatprep.subr.bf16.mxu0 %v1420_v56  ;;  %v1458_v55 = vld [vmem:[#allocation8 + $0x110] ss:$12 sps:$4 sm:$0xff]  }
  0x5e   :  { %933 = vmatprep.subr.bf16.mxu1 %v1423_v57  ;;  %v1459_v56 = vld [vmem:[#allocation8 + $0x290] ss:$12 sps:$4 sm:$0xff]  }
  0x5f   :  { %v1460_v57 = vld [vmem:[#allocation8 + $0x50] ss:$12 sps:$4 sm:$0xff]  }
  0x60   :  { %893 = vmatpush2.bf16.msra.mxu0 %v1418_v58  ;;  %v1461_v58 = vld [vmem:[#allocation8 + $0x1d0] ss:$12 sps:$4 sm:$0xff]  }
  0x61   :  { %934 = vmatpush2.bf16.msra.mxu1 %v1421_v59  ;;  %894 = vmatprep.subr.bf16.mxu0 %v1426_v60  ;;  %v1462_v59 = vld [vmem:[#allocation8 + $0xf8] ss:$12 sps:$4 sm:$0xff]  }
  0x62   :  { %935 = vmatprep.subr.bf16.mxu1 %v1429_v61  ;;  %v1463_v60 = vld [vmem:[#allocation8 + $0x278] ss:$12 sps:$4 sm:$0xff]  }
  0x63   :  { %v1464_v61 = vld [vmem:[#allocation8 + $0x38] ss:$12 sps:$4 sm:$0xff]  }
  0x64   :  { %895 = vmatpush2.bf16.msra.mxu0 %v1424_v62  ;;  %v1465_v62 = vld [vmem:[#allocation8 + $0x1b8] ss:$12 sps:$4 sm:$0xff]  }
  0x65   :  { %936 = vmatpush2.bf16.msra.mxu1 %v1427_v63  ;;  %896 = vmatprep.subr.bf16.mxu0 %v1432_v0  ;;  %v1466_v63 = vld [vmem:[#allocation8 + $0xe0] ss:$12 sps:$4 sm:$0xff]  }
  0x66   :  { %937 = vmatprep.subr.bf16.mxu1 %v1435_v1  ;;  %v1467_v0 = vld [vmem:[#allocation8 + $0x260] ss:$12 sps:$4 sm:$0xff]  }
  0x67   :  { %v1468_v1 = vld [vmem:[#allocation8 + $0x20] ss:$12 sps:$4 sm:$0xff]  }
  0x68   :  { %897 = vmatpush2.bf16.msra.mxu0 %v1430_v2  ;;  %v1469_v2 = vld [vmem:[#allocation8 + $0x1a0] ss:$12 sps:$4 sm:$0xff]  }
  0x69   :  { %938 = vmatpush2.bf16.msra.mxu1 %v1433_v3  ;;  %898 = vmatprep.subr.bf16.mxu0 %v1438_v4  ;;  %v1470_v3 = vld [vmem:[#allocation8 + $0xc8] ss:$12 sps:$4 sm:$0xff]  }
  0x6a   :  { %939 = vmatprep.subr.bf16.mxu1 %v1441_v5  ;;  %v1471_v4 = vld [vmem:[#allocation8 + $0x248] ss:$12 sps:$4 sm:$0xff]  }
  0x6b   :  { %v1472_v5 = vld [vmem:[#allocation8 + $0x8] ss:$12 sps:$4 sm:$0xff]  }
  0x6c   :  { %899 = vmatpush2.bf16.msra.mxu0 %v1436_v6  ;;  %v1473_v6 = vld [vmem:[#allocation8 + $0x188] ss:$12 sps:$4 sm:$0xff]  }
  0x6d   :  { %940 = vmatpush2.bf16.msra.mxu1 %v1439_v7  ;;  %1275 = vmatprep.subr.bf16.mxu0 %v1442_v8  ;;  %v1568_v7 = vmov 1966171168  }
  0x6e   :  { %1297 = vmatprep.subr.bf16.mxu1 %v1443_v9  ;;  %v1057_v8 = vunpack.c.l.s4 %v1568_v7 }
  0x70   :  { %v1058_v9 = vunpack.c.0.s8 %v1057_v8 }
  0x72   :  { %v1061_v16 = vsub.s32 %v1058_v9, %v1624_v11 }
  0xef   :  { %v155_v21 = vpop.f32.mrf.mxu0 }
  0xf0   :  { %v196_v22 = vpop.f32.mrf.mxu1  ;;  %v156_v23 = vadd.f32 %v155_v21, %v80_v17  ;;  %v1069_v17 = vrot.slane %v1055_v14, %v1061_v16  ;;  %v339_v21 = vld [vmem:[%s1668_s4] sm:$0x7]  ;;  %s1571_s4 = smov [#allocation9]  }
  0xf1   :  { %v197_v24 = vadd.f32 %v196_v22, %v88_v18  ;;  %v157_v25 = vpop.f32.mrf.mxu0  ;;  %v1569_v18 = vmov 0.0   ;;  %v344_v22 = vrot.slane %v339_v21, %v1627_v12  ;;  %s1162_s5 = sshll.u32 %s1571_s4, 4  ;;  %s1163_s5 = int_to_ptr.vmem [resolvable:$true] %s1162_s5 }
  0xf2   :  { %v198_v26 = vpop.f32.mrf.mxu1  ;;  %v158_v28 = vadd.f32 %v157_v25, %v84_v19  ;;  %v203_v30 = vmax.f32 %v156_v23, 0.0  ;;  %v1062_v19 = vrot.slane %v1274_v10, %v1061_v16  ;;  %v348_v23 = vrot.slane %v339_v21, %v83_v15  ;;  %s1534_s23 = scalar_lea.vmem %s1163_s5, 16  ;;  %s1538_s24 = scalar_lea.vmem %s1163_s5, 32 }
  0xf3   :  { %v205_v27 = vmax.f32 %v197_v24, 0.0  ;;  %v199_v29 = vadd.f32 %v198_v26, %v92_v20  ;;  %v159_v31 = vpop.f32.mrf.mxu0  ;;  %v1037_v20 = vld [vmem:[#allocation2] sm:$0x1]  ;;  %p1535_p1 = scmp.ne.s32.totalorder %s1163_s5, %s1534_s23  ;;  %p1539_p2 = scmp.lt.s32.totalorder %s1163_s5, %s1163_s5 }
  0xf4   :  { %v200_v32 = vpop.f32.mrf.mxu1  ;;  %v204_v33 = vmax.f32 %v158_v28, 0.0  ;;  %v1642_v42 = vpack.c.bf16 %v203_v30, %v203_v30  ;;  %1040 = vperm.xlu0 %1339, %v1037_v20   ;;  %p1540_p3 = scmp.lt.s32.totalorder %s1538_s24, %s1534_s23 }
  0xf5   :  { %v206_v34 = vmax.f32 %v199_v29, 0.0  ;;  %v1640_v35 = vpack.c.bf16 %v205_v27, %v205_v27  ;;  %v160_v36 = vpop.f32.mrf.mxu0 }
  0xf6   :  { %v201_v37 = vpop.f32.mrf.mxu1  ;;  %v208_v38 = vpack.c.bf16 %v204_v33, %v204_v33  ;;  %p1541_p4 = por %p1540_p3, %p1539_p2 }
  0xf7   :  { %v210_v39 = vpack.c.bf16 %v206_v34, %v206_v34 }
  0xf8   :  { %900 = vmatprep.mubr.bf16.mxu0 %v208_v38  ;;  %p1542_p5 = pnand %p1541_p4, %p1535_p1 }
  0xf9   :  { %941 = vmatprep.mubr.bf16.mxu1 %v210_v39  ;;  %901 = vmatmul.mubr.bf16.vlgmr.msra.gmra.mxu0 %v1642_v42 }
  0xfa   :  { %942 = vmatmul.mubr.bf16.vlgmr.msra.gmra.mxu1 %v1640_v35  ;;  %1276 = vmatpush3.bf16.msra.mxu0 %v1444_v40 }
  0xfb   :  { %1298 = vmatpush3.bf16.msra.mxu1 %v1445_v41  ;;  %982 = vmatprep.mubr.bf16.mxu0 %v208_v38  ;;  %v352_v41 = vrot.slane %v339_v21, %v87_v13 }
  0xfc   :  { %1022 = vmatprep.mubr.bf16.mxu1 %v210_v39  ;;  %1277 = vmatprep.subr.bf16.mxu0 %v1446_v43 }
  0xfd   :  { %1299 = vmatprep.subr.bf16.mxu1 %v1447_v44 }
  0xfe   :  { %1278 = vmatpush3.bf16.msra.mxu0 %v1448_v45 }
  0xff   :  { %1300 = vmatpush3.bf16.msra.mxu1 %v1449_v46  ;;  %1279 = vmatprep.subr.bf16.mxu0 %v1450_v47 }
 0x100   :  { %1301 = vmatprep.subr.bf16.mxu1 %v1451_v48 }
 0x102   :  { %1280 = vmatpush3.bf16.msra.mxu0 %v1452_v49 }
 0x103   :  { %1302 = vmatpush3.bf16.msra.mxu1 %v1453_v50  ;;  %1281 = vmatprep.subr.bf16.mxu0 %v1454_v51 }
 0x104   :  { %1303 = vmatprep.subr.bf16.mxu1 %v1455_v52 }
 0x106   :  { %1282 = vmatpush3.bf16.msra.mxu0 %v1456_v53 }
 0x107   :  { %1304 = vmatpush3.bf16.msra.mxu1 %v1457_v54  ;;  %1283 = vmatprep.subr.bf16.mxu0 %v1458_v55  ;;  %v1070_v54 = vcombine.high %v1062_v19, %v1062_v19 }
 0x108   :  { %1305 = vmatprep.subr.bf16.mxu1 %v1459_v56 }
 0x10a   :  { %1284 = vmatpush3.bf16.msra.mxu0 %v1460_v57 }
 0x10b   :  { %1306 = vmatpush3.bf16.msra.mxu1 %v1461_v58  ;;  %1285 = vmatprep.subr.bf16.mxu0 %v1462_v59 }
 0x10c   :  { %1307 = vmatprep.subr.bf16.mxu1 %v1463_v60 }
 0x10e   :  { %1286 = vmatpush3.bf16.msra.mxu0 %v1464_v61 }
 0x10f   :  { %1308 = vmatpush3.bf16.msra.mxu1 %v1465_v62  ;;  %1287 = vmatprep.subr.bf16.mxu0 %v1466_v63 }
 0x110   :  { %1309 = vmatprep.subr.bf16.mxu1 %v1467_v0 }
 0x112   :  { %1288 = vmatpush3.bf16.msra.mxu0 %v1468_v1 }
 0x113   :  { %1310 = vmatpush3.bf16.msra.mxu1 %v1469_v2  ;;  %1289 = vmatprep.subr.bf16.mxu0 %v1470_v3 }
 0x114   :  { %1311 = vmatprep.subr.bf16.mxu1 %v1471_v4 }
 0x116   :  { %1290 = vmatpush3.bf16.msra.mxu0 %v1472_v5 }
 0x117   :  { %1312 = vmatpush3.bf16.msra.mxu1 %v1473_v6 }
 0x118   :  { %1321 = vmatprep.subr.bf16.mxu1 %v1569_v18 }
 0x119   :  { %983 = vmatmul.mubr.bf16.vlgmr.msra.gmra.mxu0 %v1642_v42 }
 0x11a   :  { %1023 = vmatmul.mubr.bf16.vlgmr.msra.gmra.mxu1 %v1640_v35  ;;  %1106 = vmatprep.mubr.bf16.mxu0 %v1069_v17 }
 0x11b   :  { %1323 = vmatprep.mubr.msk.bf16.mxu1 %vm1570_vm1, %v1569_v18 }
 0x16f   :  { %v1041_v13 = vpop.permute.xlu0 %1040 }
 0x170   :  { %v1046_v58 = vrot.slane %v1041_v13, %v1627_v12 }
 0x1b9   :  { %v902_v24 = vpop.f32.mrf.mxu0 }
 0x1ba   :  { %v943_v25 = vpop.f32.mrf.mxu1  ;;  %v903_v26 = vadd.f32 %v902_v24, %v344_v22 }
 0x1bb   :  { %v904_v27 = vpop.f32.mrf.mxu0 }
 0x1bc   :  { %v945_v28 = vpop.f32.mrf.mxu1  ;;  %v944_v29 = vadd.f32 %v943_v25, %v903_v26  ;;  %v905_v30 = vadd.f32 %v904_v27, %v348_v23 }
 0x1bd   :  { %v906_v31 = vpop.f32.mrf.mxu0 }
 0x1be   :  { %v947_v32 = vpop.f32.mrf.mxu1  ;;  %v946_v33 = vadd.f32 %v945_v28, %v905_v30  ;;  %v1030_v34 = vmax.f32 %v944_v29, 0.0 }
 0x1bf   :  { %v907_v35 = vpop.f32.mrf.mxu0 }
 0x1c0   :  { %v948_v36 = vpop.f32.mrf.mxu1  ;;  %v1031_v37 = vmax.f32 %v946_v33, 0.0  ;;  %v1034_v39 = vpack.c.bf16 %v1030_v34, %v1030_v34 }
 0x1c2   :  { %v1035_v38 = vpack.c.bf16 %v1031_v37, %v1031_v37 }
 0x1c4   :  { %1088 = vmatprep.subr.bf16.mxu0 %v1035_v38 }
 0x1c5   :  { %1089 = vmatpush1.bf16.xpose.msra.mxu0 %v1034_v39 }
 0x1cc   :  { %1107 = vmatmul.mubr.bf16.vlgmr.msra.gmra.mxu0 %v1062_v19 }
 0x1d9   :  { %v1291_v15 = vpop.f32.mrf.mxu0 }
 0x1da   :  { %v1313_v40 = vpop.f32.mrf.mxu1 }
 0x1db   :  { %v1292_v42 = vpop.f32.mrf.mxu0 }
 0x1dc   :  { %v1314_v43 = vpop.f32.mrf.mxu1  ;;  %v1293_v44 = vadd.f32 %v1292_v42, %v1291_v15 }
 0x1dd   :  { %v1294_v45 = vpop.f32.mrf.mxu0  ;;  %v1315_v48 = vadd.f32 %v1314_v43, %v1313_v40 }
 0x1de   :  { %v1316_v46 = vpop.f32.mrf.mxu1  ;;  %v985_v47 = vadd.f32 %v1293_v44, %v352_v41 }
 0x1df   :  { %v1295_v49 = vpop.f32.mrf.mxu0 }
 0x1e0   :  { %v1317_v50 = vpop.f32.mrf.mxu1  ;;  %v1025_v51 = vadd.f32 %v1315_v48, %v985_v47 }
 0x1e2   :  { %v1032_v52 = vmax.f32 %v1025_v51, 0.0 }
 0x1e4   :  { %v1036_v53 = vpack.c.bf16 %v1032_v52, %v1032_v52 }
 0x1e6   :  { %1322 = vmatpush3.bf16.xpose.msra.mxu1 %v1036_v53 }
 0x1ed   :  { %1324 = vmatmul.mubr.bf16.vlgmr.msra.gmra.mxu1 %v1070_v54 }
 0x28c   :  { %v1108_v55 = vpop.f32.mrf.mxu0 }
 0x28d   :  { %v1109_v59 = vadd.f32 %v1108_v55, %v1046_v58 }
 0x28e   :  { %v1110_v56 = vpop.f32.mrf.mxu0 }
 0x290   :  { %v1111_v57 = vpop.f32.mrf.mxu0 }
 0x292   :  { %v1112_v11 = vpop.f32.mrf.mxu0 }
 0x2ad   :  { %v1148_v60 = vpop.f32.mrf.mxu1 }
 0x2ae   :  { %v1149_v61 = vadd.f32 %v1148_v60, %v1109_v59 }
 0x2af   :  { %v1325_v62 = vpop.f32.mrf.mxu1 }
 0x2b0   :  { %1155 = vst.msk [vmem:[#allocation9] sm:$0x1] %vm1154_vm2, %v1149_v61 }
 0x2b1   :  { %v1151_v63 = vpop.f32.mrf.mxu1 }
 0x2b2   :  { %1545 = shalt.err (!%p1542_p5)
}
 0x2b3   :  { %1165 = dma.vmem_to_hbm [thread:$0]  %s1163_s5, 16, %s1671_s7, [#allocation5]   ;;  %v1326_v12 = vpop.f32.mrf.mxu1 }
 0x2b4   :  { %1558 = dma.done.wait [#allocation5], 16  }
 0x2b5   :  { %1559 = vsyncadd [#allocation5], 4294967280 }
 0x2b6   :  { %1169 = vsyncpa [#allocation4], 1 }
 0x2b7   :  { %1170 = vsyncpa [#allocation7], 1 }
 0x2b8   :  { %1171 = vsyncpa [#allocation5], 1 }

</bundles_post_ra>
